<compile_context>
chip_gen: v7x
topology: tpu7x:2x2x1
jax: 0.10.0
libtpu: 0.0.40
codegen_flags: <defaults>
</compile_context>

<pallas_src>
import jax
import jax.numpy as jnp
from jax.experimental import pallas as pl
from jax.experimental.pallas import tpu as pltpu


def _round_up(a: int, b: int) -> int:
    return (a + b - 1) // b * b


def _cdiv(a: int, b: int) -> int:
    return (a + b - 1) // b


# ----------------------------------------------------------------------------
# Kernels
# ----------------------------------------------------------------------------
def _ffn_kernel_out_acc(x_ref, w1_ref, b1_ref, w2_ref, b2_ref, o_ref):
    """f32 output: accumulate directly into the resident output block."""
    j = pl.program_id(1)

    @pl.when(j == 0)
    def _init():
        # bias2 folded into the accumulator init (saves the finalize add).
        o_ref[...] = jnp.broadcast_to(b2_ref[...], o_ref.shape)

    h = jnp.dot(x_ref[...], w1_ref[...], preferred_element_type=jnp.float32)
    h = jnp.maximum(h + b1_ref[...], 0.0)          # bias1 + ReLU, f32 epilogue
    # dropout: identity at inference.
    o_ref[...] += jnp.dot(h.astype(w2_ref.dtype), w2_ref[...],
                          preferred_element_type=jnp.float32)


def _ffn_kernel_scratch_acc(x_ref, w1_ref, b1_ref, w2_ref, b2_ref, o_ref, acc_ref):
    """non-f32 output: f32 scratch accumulator, cast on the last d_ff chunk."""
    j = pl.program_id(1)

    @pl.when(j == 0)
    def _init():
        acc_ref[...] = jnp.broadcast_to(b2_ref[...], acc_ref.shape)

    h = jnp.dot(x_ref[...], w1_ref[...], preferred_element_type=jnp.float32)
    h = jnp.maximum(h + b1_ref[...], 0.0)
    acc_ref[...] += jnp.dot(h.astype(w2_ref.dtype), w2_ref[...],
                            preferred_element_type=jnp.float32)

    @pl.when(j == pl.num_programs(1) - 1)
    def _finalize():
        o_ref[...] = acc_ref[...].astype(o_ref.dtype)


# ----------------------------------------------------------------------------
# Chip-aware tiling
# ----------------------------------------------------------------------------
def _vmem_capacity_bytes() -> int:
    """Physical per-core VMEM; conservative 64 MiB if the chip is unknown."""
    try:
        info = pltpu.get_tpu_info()
        cap = getattr(info, "vmem_capacity_bytes", None)
        if cap:
            return int(cap)
    except Exception:
        pass
    try:
        kind = jax.devices()[0].device_kind.lower()
    except Exception:
        kind = ""
    if "v7" in kind or "7x" in kind:
        return 64 * 1024 * 1024
    if any(t in kind for t in ("v4", "v5", "v6")):
        return 128 * 1024 * 1024
    return 64 * 1024 * 1024


def _pick_tiles(M, d_model, d_ff, isz, osz, tk_ff, vmem_bytes, use_acc, tm_req):
    # d_ff chunk: largest 128-aligned divisor of d_ff that is <= max(tk_ff, 128);
    # only fall back to the full d_ff when d_ff itself is not 128-aligned (tiny model).
    tk = None
    if d_ff % 128 == 0:
        c = min(_round_up(max(tk_ff, 128), 128), d_ff)
        while c >= 128:
            if d_ff % c == 0:
                tk = c
                break
            c -= 128
    if tk is None:
        tk = d_ff

    def vmem_need(tm):
        n = 2 * tm * d_model * isz             # x block (double-buffered)
        n += 2 * d_model * tk * isz            # W1 slice
        n += 2 * tk * d_model * isz            # W2 slice
        n += 2 * (tk + d_model) * 4            # bias slices
        n += 2 * tm * d_model * osz            # out block
        if use_acc:
            n += tm * d_model * 4              # f32 accumulator (single-buffered)
        return n

    m_cap = _round_up(M, 16)                   # bf16 sublane packing
    if tm_req is not None:
        tm = min(_round_up(max(tm_req, 16), 16), m_cap)
    else:
        budget = int(vmem_bytes * 0.75)
        cands = [c for c in (1024, 768, 512, 384, 256, 128, 64, 32, 16) if c <= m_cap]
        if not cands:
            cands = [16]
        tm = cands[-1]
        for c in cands:                        # largest tile that fits the budget
            if vmem_need(c) <= budget:
                tm = c
                break

    vmem_limit = max(vmem_need(tm) + (16 << 20), 32 << 20)
    vmem_limit = min(vmem_limit, vmem_bytes - (8 << 20))   # headroom, <= physical
    return tm, tk, int(vmem_limit)


# ----------------------------------------------------------------------------
# Wrapper
# ----------------------------------------------------------------------------
def feed_forward(x, w1, b1, w2, b2, *, tm=None, tk_ff=512,
                 compute_dtype=jnp.bfloat16):
    """x: (B, S, d_model). w1: (d_model, d_ff), b1: (d_ff,),
    w2: (d_ff, d_model), b2: (d_model,).  Output dtype matches x."""
    B, S, d_model = x.shape
    d_ff = w1.shape[1]
    M = B * S
    out_dtype = x.dtype
    use_acc = jnp.dtype(out_dtype) != jnp.dtype(jnp.float32)

    isz = jnp.dtype(compute_dtype).itemsize
    osz = jnp.dtype(out_dtype).itemsize
    vmem_bytes = _vmem_capacity_bytes()
    tm_eff, tk, vmem_limit = _pick_tiles(M, d_model, d_ff, isz, osz, tk_ff,
                                         vmem_bytes, use_acc, tm)

    # No host-side pad: partial last row tile is handled by Pallas (rows are
    # independent; out-of-range output rows are never written back).
    x2d = x.reshape(M, d_model).astype(compute_dtype)
    w1c = w1.astype(compute_dtype)
    w2c = w2.astype(compute_dtype)
    b1_2d = b1.reshape(1, d_ff).astype(jnp.float32)
    b2_2d = b2.reshape(1, d_model).astype(jnp.float32)

    n_row_tiles = _cdiv(M, tm_eff)
    grid = (n_row_tiles, d_ff // tk)

    cost = pl.CostEstimate(
        flops=4 * M * d_model * d_ff,                       # two matmuls
        transcendentals=0,
        bytes_accessed=(M * d_model * isz                   # x
                        + n_row_tiles * 2 * d_model * d_ff * isz  # W1+W2, re-streamed per row tile
                        + (d_ff + d_model) * 4              # biases
                        + M * d_model * osz),               # out
    )

    kernel = _ffn_kernel_scratch_acc if use_acc else _ffn_kernel_out_acc
    scratch = [pltpu.VMEM((tm_eff, d_model), jnp.float32)] if use_acc else []

    out = pl.pallas_call(
        kernel,
        out_shape=jax.ShapeDtypeStruct((M, d_model), out_dtype),
        grid_spec=pltpu.PrefetchScalarGridSpec(
            num_scalar_prefetch=0,
            grid=grid,
            in_specs=[
                pl.BlockSpec((tm_eff, d_model), lambda i, j: (i, 0)),  # x rows
                pl.BlockSpec((d_model, tk), lambda i, j: (0, j)),      # W1 slice
                pl.BlockSpec((1, tk), lambda i, j: (0, j)),            # b1 slice
                pl.BlockSpec((tk, d_model), lambda i, j: (j, 0)),      # W2 slice
                pl.BlockSpec((1, d_model), lambda i, j: (0, 0)),       # b2
            ],
            out_specs=pl.BlockSpec((tm_eff, d_model), lambda i, j: (i, 0)),
            scratch_shapes=scratch,
        ),
        compiler_params=pltpu.CompilerParams(
            # rows: megacore-shardable; d_ff: sequential reduction axis.
            dimension_semantics=("parallel", "arbitrary"),
            vmem_limit_bytes=vmem_limit,
        ),
        cost_estimate=cost,
    )(x2d, w1c, b1_2d, w2c, b2_2d)

    return out.reshape(B, S, d_model)


def _init_linear(key, in_features, out_features):
    # Mimic PyTorch nn.Linear default init: U(-1/sqrt(in), 1/sqrt(in)).
    kw, kb = jax.random.split(key)
    bound = 1.0 / (in_features ** 0.5)
    w = jax.random.uniform(kw, (in_features, out_features), jnp.float32,
                           minval=-bound, maxval=bound)   # stored transposed
    b = jax.random.uniform(kb, (out_features,), jnp.float32,
                           minval=-bound, maxval=bound)
    return w, b


if __name__ == "__main__":
    key = jax.random.PRNGKey(0)
    k_x, k_l1, k_l2 = jax.random.split(key, 3)

    B, S, d_model, d_ff = 2, 8, 32, 64
    x = jax.random.normal(k_x, (B, S, d_model), jnp.float32)
    w1, b1 = _init_linear(k_l1, d_model, d_ff)
    w2, b2 = _init_linear(k_l2, d_ff, d_model)

    # Reference in plain JAX (dropout is identity at inference).
    ref = jnp.maximum(x.reshape(-1, d_model) @ w1 + b1, 0.0) @ w2 + b2
    ref = ref.reshape(B, S, d_model)

    # f32 MXU path, f32 output (accumulate-into-output kernel): tight tolerance.
    out_f32 = jax.block_until_ready(
        feed_forward(x, w1, b1, w2, b2, compute_dtype=jnp.float32))
    assert jnp.allclose(out_f32, ref, atol=1e-5, rtol=1e-5), "f32 mismatch"

    # bf16 MXU path (default, fast on TPU): looser tolerance vs f32 reference.
    out_bf16 = jax.block_until_ready(feed_forward(x, w1, b1, w2, b2))
    assert jnp.allclose(out_bf16, ref, atol=5e-2, rtol=5e-2), "bf16 mismatch"

    # bf16 activations (non-f32 output -> scratch-accumulator kernel path).
    out_bx = jax.block_until_ready(
        feed_forward(x.astype(jnp.bfloat16), w1, b1, w2, b2))
    assert jnp.allclose(out_bx.astype(jnp.float32), ref, atol=1e-1, rtol=1e-1), \
        "bf16-activation mismatch"

    # TODO(synk): training-mode dropout (random mask) not implemented; kernel is
    # the inference forward pass (dropout == identity), matching eval() semantics.
    print("KERNEL_OK")
</pallas_src>

<mosaic_0001>
module attributes {stable_mosaic.version = 11 : i64} {
  func.func @_ffn_kernel_out_acc(%arg0: i32, %arg1: i32, %arg2: memref<16x32xf32, #tpu.memory_space<vmem>>, %arg3: memref<32x64xf32, #tpu.memory_space<vmem>>, %arg4: memref<1x64xf32, #tpu.memory_space<vmem>>, %arg5: memref<64x32xf32, #tpu.memory_space<vmem>>, %arg6: memref<1x32xf32, #tpu.memory_space<vmem>>, %arg7: memref<16x32xf32, #tpu.memory_space<vmem>>) attributes {dimension_semantics = [#tpu.dimension_semantics<parallel>, #tpu.dimension_semantics<arbitrary>], iteration_bounds = array<i64: 1, 1>, scalar_prefetch = 0 : i64, scratch_operands = 0 : i64, tpu.core_type = #tpu.core_type<tc>, window_params = [{transform_indices = @transform_0, window_bounds = array<i64: 16, 32>}, {transform_indices = @transform_1, window_bounds = array<i64: 32, 64>}, {transform_indices = @transform_2, window_bounds = array<i64: 1, 64>}, {transform_indices = @transform_3, window_bounds = array<i64: 64, 32>}, {pipeline_mode = #tpu.pipeline_mode<synchronous>, transform_indices = @transform_4, window_bounds = array<i64: 1, 32>}, {transform_indices = @transform_5, window_bounds = array<i64: 16, 32>}]} {
    %c0_i32 = arith.constant 0 : i32
    %0 = arith.cmpi eq, %arg1, %c0_i32 : i32
    %1 = arith.extui %0 : i1 to i32
    %c0_i32_0 = arith.constant 0 : i32
    %2 = arith.cmpi ne, %1, %c0_i32_0 : i32
    scf.if %2 {
      %c0_14 = arith.constant 0 : index
      %c0_15 = arith.constant 0 : index
      %16 = vector.load %arg6[%c0_14, %c0_15] : memref<1x32xf32, #tpu.memory_space<vmem>>, vector<1x32xf32>
      %17 = vector.shape_cast %16 : vector<1x32xf32> to vector<1x32xf32>
      %18 = vector.broadcast %17 : vector<1x32xf32> to vector<16x32xf32>
      %c0_16 = arith.constant 0 : index
      %c0_17 = arith.constant 0 : index
      %19 = vector.load %arg7[%c0_16, %c0_17] : memref<16x32xf32, #tpu.memory_space<vmem>>, vector<16x32xf32>
      tpu.vector_store %arg7[%c0_16, %c0_17], %18 {strides = array<i32>} : memref<16x32xf32, #tpu.memory_space<vmem>>, vector<16x32xf32>,
    } else {
    }
    %c0 = arith.constant 0 : index
    %c0_1 = arith.constant 0 : index
    %3 = vector.load %arg2[%c0, %c0_1] : memref<16x32xf32, #tpu.memory_space<vmem>>, vector<16x32xf32>
    %c0_2 = arith.constant 0 : index
    %c0_3 = arith.constant 0 : index
    %4 = vector.load %arg3[%c0_2, %c0_3] : memref<32x64xf32, #tpu.memory_space<vmem>>, vector<32x64xf32>
    %cst = arith.constant dense<0.000000e+00> : vector<16x64xf32>
    %5 = tpu.matmul %3, %4, %cst {dimension_numbers = #tpu.dot_dimension_numbers<[1], [0], [0], [1], [0, 0, 1, 1], [], []>} : vector<16x32xf32>, vector<32x64xf32>, vector<16x64xf32> -> vector<16x64xf32>
    %c0_4 = arith.constant 0 : index
    %c0_5 = arith.constant 0 : index
    %6 = vector.load %arg4[%c0_4, %c0_5] : memref<1x64xf32, #tpu.memory_space<vmem>>, vector<1x64xf32>
    %7 = vector.broadcast %6 : vector<1x64xf32> to vector<16x64xf32>
    %8 = arith.addf %5, %7 : vector<16x64xf32>
    %cst_6 = arith.constant 0.000000e+00 : f32
    %9 = vector.broadcast %cst_6 : f32 to vector<16x64xf32>
    %10 = arith.maximumf %8, %9 : vector<16x64xf32>
    %c0_7 = arith.constant 0 : index
    %c0_8 = arith.constant 0 : index
    %11 = vector.load %arg7[%c0_7, %c0_8] : memref<16x32xf32, #tpu.memory_space<vmem>>, vector<16x32xf32>
    %c0_9 = arith.constant 0 : index
    %c0_10 = arith.constant 0 : index
    %12 = vector.load %arg5[%c0_9, %c0_10] : memref<64x32xf32, #tpu.memory_space<vmem>>, vector<64x32xf32>
    %cst_11 = arith.constant dense<0.000000e+00> : vector<16x32xf32>
    %13 = tpu.matmul %10, %12, %cst_11 {dimension_numbers = #tpu.dot_dimension_numbers<[1], [0], [0], [1], [0, 0, 1, 1], [], []>} : vector<16x64xf32>, vector<64x32xf32>, vector<16x32xf32> -> vector<16x32xf32>
    %14 = arith.addf %11, %13 : vector<16x32xf32>
    %c0_12 = arith.constant 0 : index
    %c0_13 = arith.constant 0 : index
    %15 = vector.load %arg7[%c0_12, %c0_13] : memref<16x32xf32, #tpu.memory_space<vmem>>, vector<16x32xf32>
    tpu.vector_store %arg7[%c0_12, %c0_13], %14 {strides = array<i32>} : memref<16x32xf32, #tpu.memory_space<vmem>>, vector<16x32xf32>,
    return
  }
  func.func @transform_0(%arg0: i32, %arg1: i32) -> (i32, i32) {
    %c0_i32 = arith.constant 0 : i32
    %c0_i32_0 = arith.constant 0 : i32
    return %arg0, %c0_i32 : i32, i32
  }
  func.func @transform_1(%arg0: i32, %arg1: i32) -> (i32, i32) {
    %c0_i32 = arith.constant 0 : i32
    %c0_i32_0 = arith.constant 0 : i32
    return %c0_i32, %arg1 : i32, i32
  }
  func.func @transform_2(%arg0: i32, %arg1: i32) -> (i32, i32) {
    %c0_i32 = arith.constant 0 : i32
    %c0_i32_0 = arith.constant 0 : i32
    return %c0_i32, %arg1 : i32, i32
  }
  func.func @transform_3(%arg0: i32, %arg1: i32) -> (i32, i32) {
    %c0_i32 = arith.constant 0 : i32
    %c0_i32_0 = arith.constant 0 : i32
    return %arg1, %c0_i32 : i32, i32
  }
  func.func @transform_4(%arg0: i32, %arg1: i32) -> (i32, i32) {
    %c0_i32 = arith.constant 0 : i32
    %c0_i32_0 = arith.constant 0 : i32
    %c0_i32_1 = arith.constant 0 : i32
    return %c0_i32, %c0_i32_0 : i32, i32
  }
  func.func @transform_5(%arg0: i32, %arg1: i32) -> (i32, i32) {
    %c0_i32 = arith.constant 0 : i32
    %c0_i32_0 = arith.constant 0 : i32
    return %arg0, %c0_i32 : i32, i32
  }
}

</mosaic_0001>

<bundles_post_ra>
// kernel: tpu_custom_call.1
= control target key start
LH: loop header
LB: loop body
LE: loop exit
PB: predicated region body
PF: predicated region fallthrough
CT: control target
= control target key end

     0   :  { %vm32_vm0 = vcmask 261120   ;;  %s446_s0 = inlined_call_operand.vmem [shape: f32[16,32], index: 0, kind: input, shape index: {}]   ;;  %s447_s1 = inlined_call_operand.vmem [shape: f32[32,64], index: 1, kind: input, shape index: {}]   ;;  %s448_s2 = inlined_call_operand.vmem [shape: f32[1,64], index: 2, kind: input, shape index: {}]   ;;  %s449_s3 = inlined_call_operand.vmem [shape: f32[64,32], index: 3, kind: input, shape index: {}]   ;;  %s450_s4 = inlined_call_operand.vmem [shape: f32[1,32], index: 4, kind: input, shape index: {}]   ;;  %s451_s5 = inlined_call_operand.hbm [shape: f32[16,32], index: 5, kind: output, shape index: {}]  }
   0x1   :  { %v37_v0 = vld [vmem:[%s447_s1] sm:$0xff]  ;;  %v38_v1 = vld [vmem:[%s447_s1 + $0x8] sm:$0xff]  ;;  %v39_v2 = vld [vmem:[%s447_s1 + $0x10] sm:$0xff] }
   0x2   :  { %v296_v3 = vpack.c.bf16 %v38_v1, %v37_v0  ;;  %v40_v4 = vld [vmem:[%s447_s1 + $0x18] sm:$0xff]  ;;  %v35_v5 = vld [vmem:[%s446_s0] sm:$0xff]  ;;  %v135_v8 = vld [vmem:[%s449_s3 + $0x8] sm:$0xff] }
   0x3   :  { %v300_v6 = vpack.c.bf16 %v40_v4, %v39_v2  ;;  %274 = vmatprep.mubr.msk.f32.mxu0 %vm32_vm0, %v35_v5  ;;  %v134_v7 = vld [vmem:[%s449_s3] sm:$0xff]  ;;  %v136_v9 = vld [vmem:[%s449_s3 + $0x10] sm:$0xff]  ;;  %v137_v11 = vld [vmem:[%s449_s3 + $0x18] sm:$0xff] }
   0x4   :  { %297 = vmatprep.subr.bf16.mxu0 %v296_v3  ;;  %v304_v10 = vpack.c.bf16 %v135_v8, %v134_v7  ;;  %v308_v12 = vpack.c.bf16 %v137_v11, %v136_v9  ;;  %v138_v13 = vld [vmem:[%s449_s3 + $0x20] sm:$0xff]  ;;  %v139_v14 = vld [vmem:[%s449_s3 + $0x28] sm:$0xff] }
   0x5   :  { %299 = vmatpush3.bf16.msra.mxu0 %v296_v3 }
   0x6   :  { %10 = vsyncpa [#allocation3], 0  ;;  %301 = vmatprep.subr.bf16.mxu0 %v300_v6  ;;  %305 = vmatprep.subr.bf16.mxu1 %v304_v10  ;;  %v312_v15 = vpack.c.bf16 %v139_v14, %v138_v13  ;;  %v36_v16 = vld [vmem:[%s446_s0 + $0x8] sm:$0xff]  ;;  %v140_v17 = vld [vmem:[%s449_s3 + $0x30] sm:$0xff]  ;;  %vm142_vm1 = vcmask 523264  }
   0x7   :  { %307 = vmatpush3.bf16.msra.mxu1 %v304_v10  ;;  %v141_v18 = vld [vmem:[%s449_s3 + $0x38] sm:$0xff]  ;;  %v244_v20 = vld [vmem:[%s450_s4] ss:$0 sm:$0xff]  ;;  %s347_s3 = smov [#allocation2]  }
   0x8   :  { %309 = vmatprep.subr.bf16.mxu1 %v308_v12  ;;  %v316_v19 = vpack.c.bf16 %v141_v18, %v140_v17  ;;  %34 = vst.msk [vmem:[#allocation2 + $0x8] sm:$0xff] %vm32_vm0, %v244_v20  ;;  %33 = vst.msk [vmem:[#allocation2] sm:$0xff] %vm32_vm0, %v244_v20  ;;  %v245_v21 = vld [vmem:[%s448_s2] ss:$0 sm:$0xff]  ;;  %s233_s4 = sshll.u32 %s347_s3, 4  ;;  %s234_s4 = int_to_ptr.vmem [resolvable:$true] %s233_s4 }
   0x9   :  { %303 = vmatpush3.bf16.msra.mxu0 %v300_v6  ;;  %s323_s2 = scalar_lea.vmem %s234_s4, 256  ;;  %p328_p1 = scmp.lt.s32.totalorder %s234_s4, %s234_s4 }
   0xa   :  { %p324_p0 = scmp.ne.s32.totalorder %s234_s4, %s323_s2  ;;  %p329_p2 = scmp.lt.s32.totalorder %s323_s2, %s323_s2 }
   0xb   :  { %311 = vmatpush3.bf16.msra.mxu1 %v308_v12 }
   0xc   :  { %275 = vmatmul.mubr.msk.f32.vlgmr.msra.gmra.mrb[0].mxu0 %vm32_vm0, %v36_v16  ;;  %313 = vmatprep.subr.bf16.mxu1 %v312_v15  ;;  %p330_p3 = por %p329_p2, %p328_p1 }
   0xe   :  { %p331_p4 = pnand %p330_p3, %p324_p0 }
   0xf   :  { %315 = vmatpush3.bf16.msra.mxu1 %v312_v15  ;;  %v133_v28 = vld [vmem:[#allocation2 + $0x8] sm:$0xff]  ;;  %v132_v29 = vld [vmem:[#allocation2] sm:$0xff] }
  0x10   :  { %317 = vmatprep.subr.bf16.mxu1 %v316_v19 }
  0x13   :  { %319 = vmatpush3.bf16.msra.mxu1 %v316_v19 }
  0xdf   :  { %v276_v22 = vpop.f32.mrb[0].mxu0 }
  0xe0   :  { %v127_v23 = vadd.f32 %v276_v22, %v245_v21  ;;  %v121_v24 = vpop.f32.mrb[1].mxu0 }
  0xe1   :  { %v122_v25 = vadd.f32 %v245_v21, %v121_v24 }
  0xe2   :  { %v131_v27 = vmax.f32 %v127_v23, 0.0 }
  0xe3   :  { %v130_v26 = vmax.f32 %v122_v25, 0.0 }
  0xe5   :  { %293 = vmatprep.mubr.msk.f32.mxu1 %vm142_vm1, %v130_v26 }
  0xe6   :  { %294 = vmatmul.mubr.msk.f32.vlgmr.msra.gmra.mrb[0].mxu1 %vm142_vm1, %v131_v27 }
 0x1b9   :  { %v295_v30 = vpop.f32.mrb[0].mxu1 }
 0x1ba   :  { %v225_v31 = vadd.f32 %v295_v30, %v133_v28  ;;  %v215_v32 = vpop.f32.mrb[1].mxu1 }
 0x1bb   :  { %v224_v33 = vadd.f32 %v215_v32, %v132_v29 }
 0x1bc   :  { %227 = vst.msk [vmem:[#allocation2 + $0x8] sm:$0xff] %vm32_vm0, %v225_v31 }
 0x1bd   :  { %226 = vst.msk [vmem:[#allocation2] sm:$0xff] %vm32_vm0, %v224_v33 }
 0x1be   :  { %334 = shalt.err (!%p331_p4)
}
 0x1bf   :  { %s335_s25 = scalar_lea.hbm %s451_s5, 256 }
 0x1c0   :  { %p336_p5 = scmp.ne.s32.totalorder %s451_s5, %s335_s25  ;;  %p339_p6 = scmp.lt.u32.totalorder %s335_s25, %s451_s5 }
 0x1c2   :  { %p341_p7 = pnand %p339_p6, %p336_p5 }
 0x1c4   :  { %344 = shalt.err (!%p341_p7)
}
 0x1c5   :  { %s348_s30 = smov 128   ;;  %s349_s6 = smov 8  }
 0x1c6   :  { %239 = dma.vmem_to_hbm [thread:$0]  %s234_s4, 256, %s451_s5, [#allocation3], %s348_s30, %s348_s30, %s349_s6  }
 0x1c7   :  { %345 = dma.done.wait [#allocation3], 256  }
 0x1c8   :  { %346 = vsyncadd [#allocation3], 4294967040 }
 0x1c9   :  { %243 = vsyncpa [#allocation3], 1 }

</bundles_post_ra>
